<compile_context>
chip_gen: v6e
topology: v6e:2x2x1
jax: 0.10.0
libtpu: 0.0.40
codegen_flags: <defaults>
</compile_context>

<pallas_src>
import functools

import jax
import jax.numpy as jnp
import numpy as np
from jax import lax
from jax.experimental import pallas as pl
from jax.experimental.pallas import tpu as pltpu


def _round_up(x, m):
    return (x + m - 1) // m * m


def _slab_offsets(In, Hd, He):
    """Row offsets inside the packed (rows, 128) weight slab."""
    r0 = In + Hd          # start of W_attn^T rows            (He rows)
    r1 = r0 + He          # start of folded head rows         (He + Hd rows)
    r2 = r1 + He + Hd     # start of bias rows                (2 rows, padded to 8)
    rows = _round_up(r2 + 2, 8)
    return r0, r1, r2, rows


# ----------------------------------------------------------------------------
# Pallas kernel factory: T-step LSTM + Luong attention + folded head, one body.
# ----------------------------------------------------------------------------
def _make_kernel(In, Hd, He, S, T, O, out_w):
    r0, r1, r2, _ = _slab_offsets(In, Hd, He)
    pad_w = out_w - (O + 2 * Hd + He + S)

    def kernel(x_ref, h0_ref, c0_ref, enc_ref, w_ref, out_ref):
        f32 = jnp.float32

        # ---- attention keys: enc @ W_attn^T + b_attn (loop-invariant, off the
        #      h-dependency chain; computed once per launch) -------------------
        enc = enc_ref[...]                                               # (S, He)
        keys = jnp.dot(enc, w_ref[r0:r1, :], preferred_element_type=f32)  # (S, 128)
        keys = keys[:, 0:Hd] + w_ref[r2 + 1:r2 + 2, 0:Hd]                # (S, Hd)

        # ---- LSTM over T input steps; h/c carried in registers ---------------
        w_x = w_ref[0:In, 0:4 * Hd]                                      # (In, 4Hd)
        w_h = w_ref[In:In + Hd, 0:4 * Hd]                                # (Hd, 4Hd)
        b_rnn = w_ref[r2:r2 + 1, 0:4 * Hd]                               # (1, 4Hd)

        def lstm_step(t, carry):
            h, c = carry
            x_t = x_ref[pl.ds(t, 1), :]                                  # (1, In)
            gates = (jnp.dot(x_t, w_x, preferred_element_type=f32)
                     + jnp.dot(h, w_h, preferred_element_type=f32)
                     + b_rnn)                                            # (1, 4Hd) i,f,g,o
            sg = jax.nn.sigmoid(gates)        # whole-vreg activations, then slice
            th = jnp.tanh(gates)
            i_g = sg[:, 0 * Hd:1 * Hd]
            f_g = sg[:, 1 * Hd:2 * Hd]
            g_g = th[:, 2 * Hd:3 * Hd]
            o_g = sg[:, 3 * Hd:4 * Hd]
            c_new = f_g * c + i_g * g_g
            h_new = o_g * jnp.tanh(c_new)
            return h_new, c_new

        h, c = lax.fori_loop(0, T, lstm_step,
                             (h0_ref[...], c0_ref[...]), unroll=True)

        # ---- Luong attention: energy = h @ keys^T -----------------------------
        energy = lax.dot_general(h, keys, (((1,), (1,)), ((), ())),
                                 preferred_element_type=f32)             # (1, S)
        energy = energy - jnp.max(energy, axis=-1, keepdims=True)
        e = jnp.exp(energy)
        denom = jnp.sum(e, axis=-1, keepdims=True)
        score = e * pl.reciprocal(denom)                                 # softmax(dim=1)
        ctx = jnp.dot(score, enc, preferred_element_type=f32)            # (1, He)

        # ---- folded attn_hid -> classifier head -------------------------------
        logits = (jnp.dot(ctx, w_ref[r1:r1 + He, :], preferred_element_type=f32)
                  + jnp.dot(h, w_ref[r1 + He:r2, :], preferred_element_type=f32))
        logits = logits[:, 0:O] + w_ref[r2 + 1:r2 + 2, Hd:Hd + O]        # (1, O)
        m = jnp.max(logits, axis=-1, keepdims=True)
        z = logits - m
        logp = z - jnp.log(jnp.sum(jnp.exp(z), axis=-1, keepdims=True))

        # ---- single lane-dense packed output store ----------------------------
        parts = [logp, h, c, ctx, score]
        if pad_w:
            parts.append(jnp.zeros((1, pad_w), f32))
        out_ref[...] = jnp.concatenate(parts, axis=1)                    # (1, out_w)

    return kernel


# ----------------------------------------------------------------------------
# One-time parameter packing into a single 128-lane-wide slab (hoisted out of
# the per-step call path).
# ----------------------------------------------------------------------------
def pack_params(params, In, Hd, He, O):
    f32 = jnp.float32
    Hd4 = 4 * Hd
    W = _round_up(max(Hd4, Hd + O), 128)
    r0, r1, r2, rows = _slab_offsets(In, Hd, He)

    def pad_cols(a):
        return jnp.pad(a, ((0, 0), (0, W - a.shape[1])))

    W_ih = params["rnn.weight_ih_l0"].astype(f32)             # (4Hd, In)
    W_hh = params["rnn.weight_hh_l0"].astype(f32)             # (4Hd, Hd)
    w_rnn = jnp.concatenate([W_ih, W_hh], axis=1).T           # (In+Hd, 4Hd), cols i,f,g,o

    w_attn_T = params["attn.weight"].astype(f32).T            # (He, Hd)

    # fold attn_hid -> classifier (exact: no nonlinearity between them)
    W_ah = params["attn_hid.weight"].astype(f32)              # (Hd, He+Hd), cols=[ctx|h]
    W_cls = params["classifier.weight"].astype(f32)           # (O, Hd)
    w_fold = W_ah.T @ W_cls.T                                 # (He+Hd, O)
    b_fold = (params["attn_hid.bias"].astype(f32) @ W_cls.T
              + params["classifier.bias"].astype(f32))        # (O,)

    b_rnn = (params["rnn.bias_ih_l0"] + params["rnn.bias_hh_l0"]).astype(f32)
    b_row0 = b_rnn.reshape(1, Hd4)                                        # (1, 4Hd)
    b_row1 = jnp.concatenate([params["attn.bias"].astype(f32).reshape(1, Hd),
                              b_fold.reshape(1, O)], axis=1)              # (1, Hd+O)
    bias = jnp.concatenate([pad_cols(b_row0), pad_cols(b_row1)], axis=0)
    bias = jnp.pad(bias, ((0, rows - r2 - 2), (0, 0)))

    slab = jnp.concatenate(
        [pad_cols(w_rnn), pad_cols(w_attn_T), pad_cols(w_fold), bias], axis=0)
    assert slab.shape == (rows, W)
    return slab


# ----------------------------------------------------------------------------
# Forward: tiny glue (reshapes only) + one pallas_call for all T steps.
# ----------------------------------------------------------------------------
def make_forward(In, Hd, He, S, T, O):
    fields = O + 2 * Hd + He + S
    out_w = _round_up(fields, 128)
    kernel = _make_kernel(In, Hd, He, S, T, O, out_w)

    vmem = functools.partial(pl.BlockSpec, memory_space=pltpu.MemorySpace.VMEM)
    call = pl.pallas_call(
        kernel,
        out_shape=jax.ShapeDtypeStruct((1, out_w), jnp.float32),
        in_specs=[vmem() for _ in range(5)],
        out_specs=vmem(),
    )

    @jax.jit
    def forward(w_slab, inp, hidden, encoder_outputs):
        h0_full, c0_full = hidden
        x = inp.reshape(T, In).astype(jnp.float32)                 # (T, In)
        h0 = h0_full.reshape(1, Hd).astype(jnp.float32)
        c0 = c0_full.reshape(1, Hd).astype(jnp.float32)
        enc = encoder_outputs.reshape(S, He).astype(jnp.float32)   # .squeeze()

        out = call(x, h0, c0, enc, w_slab)

        logp = out[:, 0:O]
        h_new = out[:, O:O + Hd]
        c_new = out[:, O + Hd:O + 2 * Hd]
        ctx = out[:, O + 2 * Hd:O + 2 * Hd + He]
        score = out[:, O + 2 * Hd + He:O + 2 * Hd + He + S]
        # restore the (n_layers=1, batch=1, Hd) hidden layout of nn.LSTM
        return logp, (h_new.reshape(1, 1, Hd), c_new.reshape(1, 1, Hd)), ctx, score

    return forward


# ----------------------------------------------------------------------------
# Deterministic parameter init (synthetic; mirrors the module's shapes/init).
# ----------------------------------------------------------------------------
def xavier_uniform(key, shape):
    fan_out, fan_in = shape
    limit = float(np.sqrt(6.0 / (fan_in + fan_out)))
    return jax.random.uniform(key, shape, jnp.float32, -limit, limit)


def init_params(key, In, Hd, He, O):
    ks = jax.random.split(key, 8)
    return {
        "rnn.weight_ih_l0": xavier_uniform(ks[0], (4 * Hd, In)),
        "rnn.weight_hh_l0": xavier_uniform(ks[1], (4 * Hd, Hd)),
        "rnn.bias_ih_l0": jnp.zeros((4 * Hd,), jnp.float32),   # init_weight -> constant 0
        "rnn.bias_hh_l0": jnp.zeros((4 * Hd,), jnp.float32),
        "attn.weight": xavier_uniform(ks[2], (Hd, He)),
        "attn.bias": 0.05 * jax.random.normal(ks[3], (Hd,), jnp.float32),
        "attn_hid.weight": xavier_uniform(ks[4], (Hd, Hd + He)),
        "attn_hid.bias": 0.05 * jax.random.normal(ks[5], (Hd,), jnp.float32),
        "classifier.weight": xavier_uniform(ks[6], (O, Hd)),
        "classifier.bias": 0.05 * jax.random.normal(ks[7], (O,), jnp.float32),
    }


# ----------------------------------------------------------------------------
# Pure-JAX reference (mirrors the PyTorch forward op-by-op) for validation.
# nn.LSTM processes all T timesteps of `input`; attention uses the final h[0].
# ----------------------------------------------------------------------------
def reference_forward(params, inp, hidden, encoder_outputs):
    h0_full, c0_full = hidden
    Hd = h0_full.shape[-1]
    He = encoder_outputs.shape[-1]
    S = encoder_outputs.shape[0]
    T = inp.shape[0]

    h = h0_full.reshape(1, Hd)
    c = c0_full.reshape(1, Hd)
    W_ih = params["rnn.weight_ih_l0"]
    W_hh = params["rnn.weight_hh_l0"]
    b = params["rnn.bias_ih_l0"] + params["rnn.bias_hh_l0"]
    for t in range(T):
        x = inp[t].reshape(1, -1)
        gates = x @ W_ih.T + h @ W_hh.T + b
        i_g, f_g, g_g, o_g = jnp.split(gates, 4, axis=1)
        i_g, f_g, o_g = jax.nn.sigmoid(i_g), jax.nn.sigmoid(f_g), jax.nn.sigmoid(o_g)
        g_g = jnp.tanh(g_g)
        c = f_g * c + i_g * g_g
        h = o_g * jnp.tanh(c)

    enc = encoder_outputs.reshape(S, He)
    attn_w = enc @ params["attn.weight"].T + params["attn.bias"]      # (S, Hd)
    energy = h @ attn_w.T                                             # (1, S)
    score = jax.nn.softmax(energy, axis=1)
    ctx = score @ enc                                                 # (1, He)
    comb = jnp.concatenate([ctx, h], axis=1) @ params["attn_hid.weight"].T \
        + params["attn_hid.bias"]
    logits = comb @ params["classifier.weight"].T + params["classifier.bias"]
    logp = jax.nn.log_softmax(logits, axis=1)
    return logp, (h.reshape(1, 1, Hd), c.reshape(1, 1, Hd)), ctx, score


def _check(got, ref, tol=1e-4):
    g_logp, (g_h, g_c), g_ctx, g_score = got
    r_logp, (r_h, r_c), r_ctx, r_score = ref
    np.testing.assert_allclose(np.asarray(g_logp), np.asarray(r_logp), atol=tol, rtol=tol)
    np.testing.assert_allclose(np.asarray(g_h), np.asarray(r_h), atol=tol, rtol=tol)
    np.testing.assert_allclose(np.asarray(g_c), np.asarray(r_c), atol=tol, rtol=tol)
    np.testing.assert_allclose(np.asarray(g_ctx), np.asarray(r_ctx), atol=tol, rtol=tol)
    np.testing.assert_allclose(np.asarray(g_score), np.asarray(r_score), atol=tol, rtol=tol)


if __name__ == "__main__":
    # small config consistent with the module
    embed_size, hidden_size, bidirectional, n_layers = 16, 32, True, 1
    n_dir = 2 if bidirectional else 1
    Hd = hidden_size                 # hidden_size_dec
    He = n_dir * hidden_size         # hidden_size_enc = 64
    In = embed_size + He             # input_size      = 80
    O = 20                           # num_output_classes
    S = 8                            # source sequence length
    B = 1                            # forward's .squeeze()/2-D matmuls imply batch=1

    key = jax.random.PRNGKey(0)
    kp, k1, k2, k3, k4 = jax.random.split(key, 5)
    params = init_params(kp, In, Hd, He, O)
    w_slab = jax.block_until_ready(pack_params(params, In, Hd, He, O))

    h0 = jax.random.normal(k2, (n_layers, B, Hd), jnp.float32)
    c0 = jax.random.normal(k3, (n_layers, B, Hd), jnp.float32)
    encoder_outputs = jax.random.normal(k4, (S, B, He), jnp.float32)

    # Case 1: canonical single decoder step (input seq length T=1), exactly the
    # module's forward call.
    inp1 = jax.random.normal(k1, (1, B, In), jnp.float32)
    fwd1 = make_forward(In, Hd, He, S, 1, O)
    out1 = fwd1(w_slab, inp1, (h0, c0), encoder_outputs)
    jax.block_until_ready(out1)
    _check(out1, reference_forward(params, inp1, (h0, c0), encoder_outputs))

    # Case 2: T=3 LSTM steps executed inside ONE kernel launch (in-kernel loop,
    # weights/encoder DMA'd once) - the amortization the perf review asked for.
    inp3 = jax.random.normal(jax.random.PRNGKey(7), (3, B, In), jnp.float32)
    fwd3 = make_forward(In, Hd, He, S, 3, O)
    out3 = fwd3(w_slab, inp3, (h0, c0), encoder_outputs)
    jax.block_until_ready(out3)
    _check(out3, reference_forward(params, inp3, (h0, c0), encoder_outputs))

    print("KERNEL_OK")
</pallas_src>

<mosaic_0001>
module attributes {stable_mosaic.version = 11 : i64} {
  func.func @kernel(%arg0: memref<1x80xf32, #tpu.memory_space<vmem>>, %arg1: memref<1x32xf32, #tpu.memory_space<vmem>>, %arg2: memref<1x32xf32, #tpu.memory_space<vmem>>, %arg3: memref<8x64xf32, #tpu.memory_space<vmem>>, %arg4: memref<280x128xf32, #tpu.memory_space<vmem>>, %arg5: memref<1x256xf32, #tpu.memory_space<vmem>>) attributes {dimension_semantics = [], scalar_prefetch = 0 : i64, scratch_operands = 0 : i64, tpu.core_type = #tpu.core_type<tc>} {
    %c0 = arith.constant 0 : index
    %c0_0 = arith.constant 0 : index
    %0 = vector.load %arg3[%c0, %c0_0] : memref<8x64xf32, #tpu.memory_space<vmem>>, vector<8x64xf32>
    %c112 = arith.constant 112 : index
    %c0_1 = arith.constant 0 : index
    %1 = vector.load %arg4[%c112, %c0_1] : memref<280x128xf32, #tpu.memory_space<vmem>>, vector<64x128xf32>
    %cst = arith.constant dense<0.000000e+00> : vector<8x128xf32>
    %2 = tpu.matmul %0, %1, %cst {dimension_numbers = #tpu.dot_dimension_numbers<[1], [0], [0], [1], [0, 0, 1, 1], [], []>} : vector<8x64xf32>, vector<64x128xf32>, vector<8x128xf32> -> vector<8x128xf32>
    %3 = vector.extract_strided_slice %2 {offsets = [0, 0], sizes = [8, 32], strides = [1, 1]} : vector<8x128xf32> to vector<8x32xf32>
    %c273 = arith.constant 273 : index
    %c0_2 = arith.constant 0 : index
    %4 = vector.load %arg4[%c273, %c0_2] : memref<280x128xf32, #tpu.memory_space<vmem>>, vector<1x32xf32>
    %5 = vector.broadcast %4 : vector<1x32xf32> to vector<8x32xf32>
    %6 = arith.addf %3, %5 : vector<8x32xf32>
    %c0_3 = arith.constant 0 : index
    %c0_4 = arith.constant 0 : index
    %7 = vector.load %arg4[%c0_3, %c0_4] : memref<280x128xf32, #tpu.memory_space<vmem>>, vector<80x128xf32>
    %c80 = arith.constant 80 : index
    %c0_5 = arith.constant 0 : index
    %8 = vector.load %arg4[%c80, %c0_5] : memref<280x128xf32, #tpu.memory_space<vmem>>, vector<32x128xf32>
    %c272 = arith.constant 272 : index
    %c0_6 = arith.constant 0 : index
    %9 = vector.load %arg4[%c272, %c0_6] : memref<280x128xf32, #tpu.memory_space<vmem>>, vector<1x128xf32>
    %c0_7 = arith.constant 0 : index
    %c0_8 = arith.constant 0 : index
    %10 = vector.load %arg1[%c0_7, %c0_8] : memref<1x32xf32, #tpu.memory_space<vmem>>, vector<1x32xf32>
    %c0_9 = arith.constant 0 : index
    %c0_10 = arith.constant 0 : index
    %11 = vector.load %arg2[%c0_9, %c0_10] : memref<1x32xf32, #tpu.memory_space<vmem>>, vector<1x32xf32>
    %c0_i32 = arith.constant 0 : i32
    %12 = arith.index_cast %c0_i32 : i32 to index
    %c0_11 = arith.constant 0 : index
    %13 = vector.load %arg0[%12, %c0_11] : memref<1x80xf32, #tpu.memory_space<vmem>>, vector<1x80xf32>
    %cst_12 = arith.constant dense<0.000000e+00> : vector<1x128xf32>
    %14 = tpu.matmul %13, %7, %cst_12 {dimension_numbers = #tpu.dot_dimension_numbers<[1], [0], [0], [1], [0, 0, 1, 1], [], []>} : vector<1x80xf32>, vector<80x128xf32>, vector<1x128xf32> -> vector<1x128xf32>
    %cst_13 = arith.constant dense<0.000000e+00> : vector<1x128xf32>
    %15 = tpu.matmul %10, %8, %cst_13 {dimension_numbers = #tpu.dot_dimension_numbers<[1], [0], [0], [1], [0, 0, 1, 1], [], []>} : vector<1x32xf32>, vector<32x128xf32>, vector<1x128xf32> -> vector<1x128xf32>
    %16 = arith.addf %14, %15 : vector<1x128xf32>
    %17 = arith.addf %16, %9 : vector<1x128xf32>
    %18 = arith.negf %17 : vector<1x128xf32>
    %19 = math.exp %18 : vector<1x128xf32>
    %cst_14 = arith.constant 1.000000e+00 : f32
    %20 = vector.broadcast %cst_14 : f32 to vector<1x128xf32>
    %21 = arith.addf %20, %19 : vector<1x128xf32>
    %22 = arith.divf %20, %21 : vector<1x128xf32>
    %23 = math.tanh %17 : vector<1x128xf32>
    %24 = vector.extract_strided_slice %22 {offsets = [0, 0], sizes = [1, 32], strides = [1, 1]} : vector<1x128xf32> to vector<1x32xf32>
    %25 = vector.extract_strided_slice %22 {offsets = [0, 32], sizes = [1, 32], strides = [1, 1]} : vector<1x128xf32> to vector<1x32xf32>
    %26 = vector.extract_strided_slice %23 {offsets = [0, 64], sizes = [1, 32], strides = [1, 1]} : vector<1x128xf32> to vector<1x32xf32>
    %27 = vector.extract_strided_slice %22 {offsets = [0, 96], sizes = [1, 32], strides = [1, 1]} : vector<1x128xf32> to vector<1x32xf32>
    %28 = arith.mulf %25, %11 : vector<1x32xf32>
    %29 = arith.mulf %24, %26 : vector<1x32xf32>
    %30 = arith.addf %28, %29 : vector<1x32xf32>
    %31 = math.tanh %30 : vector<1x32xf32>
    %32 = arith.mulf %27, %31 : vector<1x32xf32>
    %c1_i32 = arith.constant 1 : i32
    %cst_15 = arith.constant dense<0.000000e+00> : vector<1x8xf32>
    %33 = tpu.matmul %32, %6, %cst_15 {dimension_numbers = #tpu.dot_dimension_numbers<[1], [1], [0], [0], [0, 0, 1, 0], [], []>} : vector<1x32xf32>, vector<8x32xf32>, vector<1x8xf32> -> vector<1x8xf32>
    %cst_16 = arith.constant dense<0xFF800000> : vector<1xf32>
    %34 = vector.multi_reduction <maximumf>, %33, %cst_16 [1] : vector<1x8xf32> to vector<1xf32>
    %35 = vector.shape_cast %34 : vector<1xf32> to vector<1x1xf32>
    %36 = vector.broadcast %35 : vector<1x1xf32> to vector<1x8xf32>
    %37 = arith.subf %33, %36 : vector<1x8xf32>
    %38 = math.exp %37 : vector<1x8xf32>
    %cst_17 = arith.constant dense<0.000000e+00> : vector<1xf32>
    %39 = vector.multi_reduction <add>, %38, %cst_17 [1] : vector<1x8xf32> to vector<1xf32>
    %40 = vector.shape_cast %39 : vector<1xf32> to vector<1x1xf32>
    %41 = tpu.reciprocal %40 : vector<1x1xf32> -> vector<1x1xf32>
    %42 = vector.broadcast %41 : vector<1x1xf32> to vector<1x8xf32>
    %43 = arith.mulf %38, %42 : vector<1x8xf32>
    %cst_18 = arith.constant dense<0.000000e+00> : vector<1x64xf32>
    %44 = tpu.matmul %43, %0, %cst_18 {dimension_numbers = #tpu.dot_dimension_numbers<[1], [0], [0], [1], [0, 0, 1, 1], [], []>} : vector<1x8xf32>, vector<8x64xf32>, vector<1x64xf32> -> vector<1x64xf32>
    %c176 = arith.constant 176 : index
    %c0_19 = arith.constant 0 : index
    %45 = vector.load %arg4[%c176, %c0_19] : memref<280x128xf32, #tpu.memory_space<vmem>>, vector<64x128xf32>
    %cst_20 = arith.constant dense<0.000000e+00> : vector<1x128xf32>
    %46 = tpu.matmul %44, %45, %cst_20 {dimension_numbers = #tpu.dot_dimension_numbers<[1], [0], [0], [1], [0, 0, 1, 1], [], []>} : vector<1x64xf32>, vector<64x128xf32>, vector<1x128xf32> -> vector<1x128xf32>
    %c240 = arith.constant 240 : index
    %c0_21 = arith.constant 0 : index
    %47 = vector.load %arg4[%c240, %c0_21] : memref<280x128xf32, #tpu.memory_space<vmem>>, vector<32x128xf32>
    %cst_22 = arith.constant dense<0.000000e+00> : vector<1x128xf32>
    %48 = tpu.matmul %32, %47, %cst_22 {dimension_numbers = #tpu.dot_dimension_numbers<[1], [0], [0], [1], [0, 0, 1, 1], [], []>} : vector<1x32xf32>, vector<32x128xf32>, vector<1x128xf32> -> vector<1x128xf32>
    %49 = arith.addf %46, %48 : vector<1x128xf32>
    %50 = vector.extract_strided_slice %49 {offsets = [0, 0], sizes = [1, 20], strides = [1, 1]} : vector<1x128xf32> to vector<1x20xf32>
    %c273_23 = arith.constant 273 : index
    %c32 = arith.constant 32 : index
    %51 = vector.load %arg4[%c273_23, %c32] : memref<280x128xf32, #tpu.memory_space<vmem>>, vector<1x20xf32>
    %52 = arith.addf %50, %51 : vector<1x20xf32>
    %cst_24 = arith.constant dense<0xFF800000> : vector<1xf32>
    %53 = vector.multi_reduction <maximumf>, %52, %cst_24 [1] : vector<1x20xf32> to vector<1xf32>
    %54 = vector.shape_cast %53 : vector<1xf32> to vector<1x1xf32>
    %55 = vector.broadcast %54 : vector<1x1xf32> to vector<1x20xf32>
    %56 = arith.subf %52, %55 : vector<1x20xf32>
    %57 = math.exp %56 : vector<1x20xf32>
    %cst_25 = arith.constant dense<0.000000e+00> : vector<1xf32>
    %58 = vector.multi_reduction <add>, %57, %cst_25 [1] : vector<1x20xf32> to vector<1xf32>
    %59 = vector.shape_cast %58 : vector<1xf32> to vector<1x1xf32>
    %60 = math.log %59 : vector<1x1xf32>
    %61 = vector.broadcast %60 : vector<1x1xf32> to vector<1x20xf32>
    %62 = arith.subf %56, %61 : vector<1x20xf32>
    %cst_26 = arith.constant 0.000000e+00 : f32
    %63 = vector.broadcast %cst_26 : f32 to vector<1x100xf32>
    %64 = tpu.concatenate %62, %32, %30, %44, %43, %63 in 1 : vector<1x20xf32>, vector<1x32xf32>, vector<1x32xf32>, vector<1x64xf32>, vector<1x8xf32>, vector<1x100xf32> -> vector<1x256xf32>
    %c0_27 = arith.constant 0 : index
    %c0_28 = arith.constant 0 : index
    %65 = vector.load %arg5[%c0_27, %c0_28] : memref<1x256xf32, #tpu.memory_space<vmem>>, vector<1x256xf32>
    tpu.vector_store %arg5[%c0_27, %c0_28], %64 {strides = array<i32>} : memref<1x256xf32, #tpu.memory_space<vmem>>, vector<1x256xf32>,
    return
  }
}

</mosaic_0001>

<bundles_post_ra>
// kernel: forward.1
= control target key start
LH: loop header
LB: loop body
LE: loop exit
PB: predicated region body
PF: predicated region fallthrough
CT: control target
= control target key end

     0   :  { %10 = vsyncpa [#allocation3], 0  ;;  %s1074_s0 = inlined_call_operand.vmem [shape: f32[1,80], index: 0, kind: input, shape index: {}]   ;;  %s1075_s1 = inlined_call_operand.vmem [shape: f32[1,32], index: 1, kind: input, shape index: {}]   ;;  %s1076_s2 = inlined_call_operand.hbm [shape: f32[1,32], index: 2, kind: input, shape index: {}]   ;;  %s1077_s3 = inlined_call_operand.vmem [shape: f32[8,64], index: 3, kind: input, shape index: {}]   ;;  %s1078_s4 = inlined_call_operand.hbm [shape: f32[280,128], index: 4, kind: input, shape index: {}]   ;;  %s1079_s5 = inlined_call_operand.vmem [shape: f32[1,256], index: 5, kind: output, shape index: {}]  }
   0x1   :  { %11 = vsyncpa [#allocation5], 0  ;;  %s941_s18 = smov [#allocation2]   ;;  %s942_s20 = smov [#allocation4]  }
   0x2   :  { %s22_s19 = sshll.u32 %s941_s18, 4  ;;  %s33_s21 = sshll.u32 %s942_s20, 4  ;;  %s23_s19 = int_to_ptr.vmem [resolvable:$true] %s22_s19  ;;  %s34_s21 = int_to_ptr.vmem [resolvable:$true] %s33_s21 }
   0x3   :  { %s905_s22 = scalar_lea.vmem %s23_s19, 16  ;;  %s909_s23 = scalar_lea.vmem %s23_s19, 32 }
   0x4   :  { %p906_p0 = scmp.ne.s32.totalorder %s23_s19, %s905_s22  ;;  %p910_p1 = scmp.lt.s32.totalorder %s23_s19, %s23_s19 }
   0x5   :  { %p911_p2 = scmp.lt.s32.totalorder %s909_s23, %s905_s22 }
   0x7   :  { %p912_p3 = por %p911_p2, %p910_p1 }
   0x9   :  { %p913_p4 = pnand %p912_p3, %p906_p0 }
   0xb   :  { %916 = shalt.err (!%p913_p4)
}
   0xc   :  { %25 = dma.hbm_to_vmem [thread:$0]  %s1076_s2, 16, %s23_s19, [#allocation3]  }
   0xd   :  { %s925_s26 = scalar_lea.vmem %s34_s21, 4480  ;;  %p930_p6 = scmp.lt.s32.totalorder %s34_s21, %s34_s21 }
   0xe   :  { %p926_p5 = scmp.ne.s32.totalorder %s34_s21, %s925_s26  ;;  %p931_p7 = scmp.lt.s32.totalorder %s925_s26, %s925_s26 }
  0x10   :  { %p932_p8 = por %p931_p7, %p930_p6 }
  0x12   :  { %p933_p9 = pnand %p932_p8, %p926_p5 }
  0x14   :  { %936 = shalt.err (!%p933_p9)
}
  0x15   :  { %s943_s27 = smov 128   ;;  %s944_s28 = smov 8  }
  0x16   :  { %39 = dma.hbm_to_vmem [thread:$0]  %s1078_s4, 4480, %s34_s21, [#allocation5], %s943_s27, %s943_s27, %s944_s28  }
  0x17   :  { %937 = dma.done.wait [#allocation3], 16  }
  0x18   :  { %938 = vsyncadd [#allocation3], 4294967280 }
  0x19   :  { %939 = dma.done.wait [#allocation5], 4480  }
  0x1a   :  { %940 = vsyncadd [#allocation5], 4294962816  ;;  %v945_v0 = vmov 0.0   ;;  %vm946_vm0 = vmmov 0   ;;  %v54_v1 = vld [vmem:[#allocation4 + $0xa8] sm:$0xff]  ;;  %v53_v2 = vld [vmem:[#allocation4 + $0xa0] sm:$0xff]  ;;  %v130_v26 = vlaneseq }
  0x1b   :  { %775 = vmatprep.subr.mxu0 %v945_v0  ;;  %805 = vmatprep.subr.mxu1 %v945_v0  ;;  %v144_v3 = vld [vmem:[#allocation4 + $0x48] sm:$0xff]  ;;  %v143_v4 = vld [vmem:[#allocation4 + $0x40] sm:$0xff]  ;;  %v52_v5 = vld [vmem:[#allocation4 + $0x98] sm:$0xff]  ;;  %vm55_vm1 = vcmask 523264   ;;  %vm227_vm2 = vcmask 654336   ;;  %vm153_vm3 = vcmask 261120  }
  0x1c   :  { %791 = vmatprep.mubr.msk.f32.mxu0 %vm946_vm0, %v945_v0  ;;  %825 = vmatprep.mubr.msk.f32.mxu1 %vm946_vm0, %v945_v0  ;;  %v142_v6 = vld [vmem:[#allocation4 + $0x38] sm:$0xff]  ;;  %v51_v7 = vld [vmem:[#allocation4 + $0x90] sm:$0xff]  ;;  %v50_v9 = vld [vmem:[#allocation4 + $0x88] sm:$0xff]  ;;  %v1039_v27 = vshrl.u32 %v130_v26, 7  ;;  %vm412_vm4 = vcmask 57344   ;;  %s949_s9 = smov 96  }
  0x1d   :  { %776 = vmatpush3.msra.mxu0 %v54_v1  ;;  %806 = vmatpush3.msra.mxu1 %v144_v3  ;;  %v141_v8 = vld [vmem:[#allocation4 + $0x30] sm:$0xff]  ;;  %v140_v10 = vld [vmem:[#allocation4 + $0x28] sm:$0xff]  ;;  %v49_v11 = vld [vmem:[#allocation4 + $0x80] sm:$0xff]  ;;  %s950_s10 = smov 20   ;;  %vm424_vm5 = vcmask 64512   ;;  %s951_s11 = smov 84  }
  0x1e   :  { %777 = vmatprep.subr.mxu0 %v945_v0  ;;  %807 = vmatprep.subr.mxu1 %v945_v0  ;;  %v139_v12 = vld [vmem:[#allocation4 + $0x20] sm:$0xff]  ;;  %v48_v13 = vld [vmem:[#allocation4 + $0x78] sm:$0xff]  ;;  %v47_v15 = vld [vmem:[#allocation4 + $0x70] sm:$0xff]  ;;  %v132_v28 = vsub.s32 0, %v1039_v27  ;;  %vm658_vm6 = vcmask 155648   ;;  %s952_s12 = smov 52  }
  0x1f   :  { %778 = vmatpush3.msra.mxu0 %v53_v2  ;;  %808 = vmatpush3.msra.mxu1 %v143_v4  ;;  %v138_v14 = vld [vmem:[#allocation4 + $0x18] sm:$0xff]  ;;  %v137_v16 = vld [vmem:[#allocation4 + $0x10] sm:$0xff]  ;;  %v148_v18 = vld [vmem:[#allocation4 + $0x68] sm:$0xff]  ;;  %vm684_vm7 = vcmask 162816   ;;  %vm686_vm8 = vcmask 424960   ;;  %vm688_vm9 = vcmask 687104  }
  0x20   :  { %779 = vmatprep.subr.mxu0 %v945_v0  ;;  %809 = vmatprep.subr.mxu1 %v945_v0  ;;  %v1011_v17 = vld [vmem:[%s1077_s3] sm:$0xff]  ;;  %v136_v19 = vld [vmem:[#allocation4 + $0x8] sm:$0xff]  ;;  %v145_v24 = vld [vmem:[#allocation4 + $0x50] sm:$0xff]  ;;  %vm691_vm10 = vcmask 228352   ;;  %vm713_vm11 = vcmp.lt.s32.totalorder %v130_v26, 256 }
  0x21   :  { %780 = vmatpush3.msra.mxu0 %v52_v5  ;;  %810 = vmatpush3.msra.mxu1 %v142_v6  ;;  %v147_v20 = vld [vmem:[#allocation4 + $0x60] sm:$0xff]  ;;  %v146_v22 = vld [vmem:[#allocation4 + $0x58] sm:$0xff]  ;;  %v129_v29 = vld [vmem:[#allocation4 + $0x111] sm:$0x1] }
  0x22   :  { %781 = vmatprep.subr.mxu0 %v945_v0  ;;  %811 = vmatprep.subr.mxu1 %v945_v0  ;;  %v135_v21 = vld [vmem:[#allocation4] sm:$0xff]  ;;  %v152_v23 = vld [vmem:[%s1074_s0] sm:$0x1]  ;;  %v133_v30 = vrot.slane %v129_v29, %v132_v28  ;;  %v149_v36 = vld [vmem:[#allocation4 + $0x110] sm:$0x1]  ;;  %s947_s0 = smov 64  }
  0x23   :  { %782 = vmatpush3.msra.mxu0 %v51_v7  ;;  %812 = vmatpush3.msra.mxu1 %v141_v8  ;;  %v150_v25 = vld [vmem:[%s1075_s1] sm:$0x1]  ;;  %s948_s1 = smov 32   ;;  %v505_v2 = vld [vmem:[#allocation4 + $0xe8] sm:$0xff]  ;;  %v504_v3 = vld [vmem:[#allocation4 + $0xe0] sm:$0xff] }
  0x24   :  { %783 = vmatprep.subr.mxu0 %v945_v0  ;;  %813 = vmatprep.subr.mxu1 %v945_v0  ;;  %v726_v42 = vld [vmem:[#allocation2] ss:$0 sm:$0xff]  ;;  %v502_v5 = vld [vmem:[#allocation4 + $0xd0] sm:$0xff]  ;;  %v501_v6 = vld [vmem:[#allocation4 + $0xc8] sm:$0xff] }
  0x25   :  { %784 = vmatpush3.msra.mxu0 %v50_v9  ;;  %814 = vmatpush3.msra.mxu1 %v140_v10  ;;  %v503_v4 = vld [vmem:[#allocation4 + $0xd8] sm:$0xff]  ;;  %v500_v7 = vld [vmem:[#allocation4 + $0xc0] sm:$0xff] }
  0x26   :  { %785 = vmatprep.subr.mxu0 %v945_v0  ;;  %815 = vmatprep.subr.mxu1 %v945_v0  ;;  %v499_v8 = vld [vmem:[#allocation4 + $0xb8] sm:$0xff] }
  0x27   :  { %786 = vmatpush3.msra.mxu0 %v49_v11  ;;  %816 = vmatpush3.msra.mxu1 %v139_v12  ;;  %v509_v12 = vld [vmem:[#allocation4 + $0x108] sm:$0xff] }
  0x28   :  { %787 = vmatprep.subr.mxu0 %v945_v0  ;;  %817 = vmatprep.subr.mxu1 %v945_v0 }
  0x29   :  { %788 = vmatpush3.msra.mxu0 %v48_v13  ;;  %818 = vmatpush3.msra.mxu1 %v138_v14  ;;  %v508_v13 = vld [vmem:[#allocation4 + $0x100] sm:$0xff]  ;;  %v507_v14 = vld [vmem:[#allocation4 + $0xf8] sm:$0xff] }
  0x2a   :  { %789 = vmatprep.subr.mxu0 %v945_v0  ;;  %819 = vmatprep.subr.mxu1 %v945_v0 }
  0x2b   :  { %790 = vmatpush3.msra.mxu0 %v47_v15  ;;  %820 = vmatpush3.msra.mxu1 %v137_v16  ;;  %v506_v15 = vld [vmem:[#allocation4 + $0xf0] sm:$0xff] }
  0x2c   :  { %792 = vmatmul.mubr.msk.f32.vlgmr.msra.gmra.mxu0 %vm55_vm1, %v1011_v17  ;;  %794 = vmatprep.subr.mxu0 %v945_v0  ;;  %v498_v16 = vld [vmem:[#allocation4 + $0xb0] sm:$0xff] }
  0x2d   :  { %795 = vmatpush3.msra.mxu0 %v148_v18  ;;  %821 = vmatprep.subr.mxu1 %v945_v0 }
  0x2e   :  { %796 = vmatprep.subr.mxu0 %v945_v0  ;;  %822 = vmatpush3.msra.mxu1 %v136_v19 }
  0x2f   :  { %797 = vmatpush3.msra.mxu0 %v147_v20  ;;  %823 = vmatprep.subr.mxu1 %v945_v0 }
  0x30   :  { %798 = vmatprep.subr.mxu0 %v945_v0  ;;  %824 = vmatpush3.msra.mxu1 %v135_v21 }
  0x31   :  { %799 = vmatpush3.msra.mxu0 %v146_v22  ;;  %826 = vmatmul.mubr.msk.f32.vlgmr.msra.gmra.mxu1 %vm227_vm2, %v152_v23 }
  0x32   :  { %800 = vmatprep.subr.mxu0 %v945_v0  ;;  %802 = vmatprep.mubr.msk.f32.mxu0 %vm946_vm0, %v945_v0 }
  0x33   :  { %801 = vmatpush3.msra.mxu0 %v145_v24  ;;  %849 = vmatprep.subr.mxu1 %v945_v0 }
  0x34   :  { %803 = vmatmul.mubr.msk.f32.vlgmr.msra.gmra.mxu0 %vm153_vm3, %v150_v25  ;;  %828 = vmatprep.subr.mxu0 %v945_v0 }
  0x35   :  { %830 = vmatprep.mubr.msk.f32.mxu0 %vm946_vm0, %v945_v0  ;;  %865 = vmatprep.mubr.msk.f32.mxu1 %vm946_vm0, %v945_v0 }
  0x36   :  { %850 = vmatpush3.msra.mxu1 %v505_v2 }
  0x37   :  { %851 = vmatprep.subr.mxu1 %v945_v0 }
  0x38   :  { %852 = vmatpush3.msra.mxu1 %v504_v3 }
  0x39   :  { %853 = vmatprep.subr.mxu1 %v945_v0 }
  0x3a   :  { %854 = vmatpush3.msra.mxu1 %v503_v4 }
  0x3b   :  { %855 = vmatprep.subr.mxu1 %v945_v0 }
  0x3c   :  { %856 = vmatpush3.msra.mxu1 %v502_v5 }
  0x3d   :  { %857 = vmatprep.subr.mxu1 %v945_v0 }
  0x3e   :  { %858 = vmatpush3.msra.mxu1 %v501_v6 }
  0x3f   :  { %859 = vmatprep.subr.mxu1 %v945_v0 }
  0x40   :  { %860 = vmatpush3.msra.mxu1 %v500_v7 }
  0x41   :  { %861 = vmatprep.subr.mxu1 %v945_v0 }
  0x42   :  { %862 = vmatpush3.msra.mxu1 %v499_v8 }
  0x43   :  { %863 = vmatprep.subr.mxu1 %v945_v0 }
  0x44   :  { %864 = vmatpush3.msra.mxu1 %v498_v16 }
  0xec   :  { %v125_v31 = vpop.f32.mrf.mxu0 }
  0xed   :  { %v134_v32 = vadd.f32 %v133_v30, %v125_v31 }
  0xee   :  { %v793_v33 = vpop.f32.mrf.mxu0 }
  0xef   :  { %829 = vmatpush3.xpose.msk.msra.mxu0 %vm153_vm3, %v134_v32 }
  0xf0   :  { %833 = vmatprep.subr.mxu0 %v945_v0 }
  0xf1   :  { %v297_v34 = vpop.f32.mrf.mxu1 }
  0xf3   :  { %v827_v35 = vpop.f32.mrf.mxu1 }
  0xf4   :  { %v223_v37 = vpop.f32.mrf.mxu0  ;;  %v953_v35 = vmov 1966171168  }
  0xf5   :  { %v298_v38 = vadd.f32 %v297_v34, %v223_v37 }
  0xf6   :  { %v804_v39 = vpop.f32.mrf.mxu0 }
  0xf7   :  { %v301_v40 = vadd.f32 %v298_v38, %v149_v36  ;;  %v697_v36 = vunpack.c.l.s4 %v953_v35 }
  0xf9   :  { %881 = vtanh.f32 %v301_v40  ;;  %v725_v43 = vmul.f32 -1.442695, %v301_v40 }
  0xfb   :  { %883 = vpow2.f32 %v725_v43 }
 0x106   :  { %v882_v41 = vpop.eup %881 }
 0x107   :  { %319 = vrot.lane.b32.xlu0 %v882_v41, %s947_s0  ;;  %v698_v41 = vunpack.c.0.s8 %v697_v36 }
 0x108   :  { %v884_v44 = vpop.eup %883 }
 0x109   :  { %v305_v45 = vadd.f32 1.0, %v884_v44 }
 0x10b   :  { %314 = vrot.lane.b32.xlu0 %v726_v42, %s948_s1  ;;  %885 = vrcp.f32 %v305_v45 }
 0x118   :  { %v886_v46 = vpop.eup %885 }
 0x179   :  { %v320_v47 = vpop.permute.xlu0 %319 }
 0x17a   :  { %v322_v48 = vmul.f32 %v886_v46, %v320_v47  ;;  %v701_v47 = vsub.s32 %v698_v41, %v1039_v27 }
 0x17c   :  { %324 = vrot.lane.b32.xlu1 %v322_v48, %s948_s1 }
 0x17d   :  { %v315_v49 = vpop.permute.xlu0 %314 }
 0x17e   :  { %v317_v50 = vmul.f32 %v886_v46, %v315_v49 }
 0x1ee   :  { %v325_v51 = vpop.permute.xlu1 %324 }
 0x1ef   :  { %v327_v52 = vadd.f32 %v325_v51, %v317_v50 }
 0x1f1   :  { %887 = vtanh.f32 %v327_v52 }
 0x1fe   :  { %v888_v53 = vpop.eup %887 }
 0x1ff   :  { %330 = vrot.lane.b32.xlu1 %v888_v53, %s947_s0 }
 0x271   :  { %v331_v54 = vpop.permute.xlu1 %330 }
 0x272   :  { %v1044_v55 = vmul.f32 %v886_v46, %v331_v54 }
 0x274   :  { %335 = vrot.lane.b32.xlu0 %v1044_v55, %s948_s1 }
 0x2e6   :  { %v336_v56 = vpop.permute.xlu0 %335 }
 0x2e7   :  { %831 = vmatmul.mubr.msk.f32.vlgmr.msra.gmra.mxu0 %vm153_vm3, %v336_v56 }
 0x2e8   :  { %834 = vmatpush3.msra.mxu0 %v1011_v17  ;;  %835 = vmatprep.mubr.msk.f32.mxu0 %vm946_vm0, %v945_v0 }
 0x2e9   :  { %838 = vmatprep.subr.mxu0 %v945_v0 }
 0x3a7   :  { %v408_v57 = vpop.f32.mrf.mxu0 }
 0x3a8   :  { %v413_v58 = vsel %vm412_vm4, %v408_v57, -inf }
 0x3a9   :  { %414 = vmax.xlane.f32.xlu1 %v413_v58  ;;  %v832_v59 = vpop.f32.mrf.mxu0 }
 0x432   :  { %v415_v60 = vpop.xlane.xlu1 %414 }
 0x433   :  { %v416_v61 = vsub.f32 %v408_v57, %v415_v60 }
 0x435   :  { %v417_v62 = vmul.f32 1.442695, %v416_v61 }
 0x437   :  { %889 = vpow2.f32 %v417_v62 }
 0x444   :  { %v890_v63 = vpop.eup %889 }
 0x445   :  { %v419_v1 = vsel %vm412_vm4, %v890_v63, 0.0 }
 0x446   :  { %420 = vadd.xlane.f32.xlu0 %v419_v1 }
 0x45c   :  { %654 = vrot.lane.b32.xlu0 %v129_v29, %s949_s9 }
 0x460   :  { %675 = vrot.lane.b32.xlu0 %v327_v52, %s950_s10 }
 0x4cf   :  { %v421_v9 = vpop.xlane.xlu0 %420 }
 0x4d0   :  { %891 = vrcp.f32 %v421_v9 }
 0x4d3   :  { %v655_v23 = vpop.permute.xlu0 %654 }
 0x4d7   :  { %v676_v37 = vpop.permute.xlu0 %675 }
 0x4dd   :  { %v892_v10 = vpop.eup %891 }
 0x4de   :  { %v423_v11 = vmul.f32 %v892_v10, %v890_v63 }
 0x4e0   :  { %836 = vmatmul.mubr.msk.f32.vlgmr.msra.gmra.mxu0 %vm424_vm5, %v423_v11 }
 0x4e1   :  { %839 = vmatpush3.msra.mxu0 %v509_v12  ;;  %846 = vmatprep.mubr.msk.f32.mxu0 %vm946_vm0, %v945_v0 }
 0x4e2   :  { %840 = vmatprep.subr.mxu0 %v945_v0 }
 0x4e3   :  { %841 = vmatpush3.msra.mxu0 %v508_v13 }
 0x4e4   :  { %842 = vmatprep.subr.mxu0 %v945_v0 }
 0x4e5   :  { %843 = vmatpush3.msra.mxu0 %v507_v14 }
 0x4e6   :  { %844 = vmatprep.subr.mxu0 %v945_v0 }
 0x4e7   :  { %845 = vmatpush3.msra.mxu0 %v506_v15 }
 0x4e8   :  { %847 = vmatmul.mubr.msk.f32.vlgmr.msra.gmra.mxu0 %vm153_vm3, %v336_v56 }
 0x5a0   :  { %v494_v17 = vpop.f32.mrf.mxu0 }
 0x5a1   :  { %678 = vrot.lane.b32.xlu0 %v494_v17, %s951_s11  ;;  %866 = vmatmul.mubr.msk.f32.vlgmr.msra.gmra.mxu1 %vm55_vm1, %v494_v17 }
 0x5a2   :  { %v837_v18 = vpop.f32.mrf.mxu0 }
 0x5a8   :  { %v576_v19 = vpop.f32.mrf.mxu0 }
 0x5aa   :  { %v848_v20 = vpop.f32.mrf.mxu0 }
 0x613   :  { %v679_v42 = vpop.permute.xlu0 %678 }
 0x661   :  { %v649_v21 = vpop.f32.mrf.mxu1 }
 0x662   :  { %v650_v22 = vadd.f32 %v649_v21, %v576_v19 }
 0x663   :  { %v867_v24 = vpop.f32.mrf.mxu1 }
 0x664   :  { %v657_v25 = vadd.f32 %v655_v23, %v650_v22 }
 0x666   :  { %v659_v0 = vsel %vm658_vm6, %v657_v25, -inf }
 0x667   :  { %660 = vmax.xlane.f32.xlu1 %v659_v0 }
 0x678   :  { %671 = vrot.lane.b32.xlu1 %v1044_v55, %s952_s12 }
 0x6f0   :  { %v661_v28 = vpop.xlane.xlu1 %660 }
 0x6f1   :  { %v662_v29 = vsub.f32 %v657_v25, %v661_v28 }
 0x6f3   :  { %v663_v30 = vmul.f32 1.442695, %v662_v29 }
 0x6f4   :  { %v672_v33 = vpop.permute.xlu1 %671 }
 0x6f5   :  { %893 = vpow2.f32 %v663_v30 }
 0x702   :  { %v894_v31 = vpop.eup %893 }
 0x703   :  { %v665_v32 = vsel %vm658_vm6, %v894_v31, 0.0 }
 0x704   :  { %666 = vadd.xlane.f32.xlu1 %v665_v32 }
 0x715   :  { %681 = vrot.lane.b32.xlu1 %v423_v11, %s950_s10 }
 0x78d   :  { %v667_v34 = vpop.xlane.xlu1 %666 }
 0x78e   :  { %895 = vlog2.f32 %v667_v34 }
 0x791   :  { %v682_v40 = vpop.permute.xlu1 %681 }
 0x792   :  { %v690_v44 = vsel %vm684_vm7, %v679_v42, %v682_v40 }
 0x793   :  { %v692_v49 = vsel %vm691_vm10, %v690_v44, 0.0 }
 0x79b   :  { %v896_v38 = vpop.eup %895 }
 0x79c   :  { %v669_v39 = vmul.f32 0.6931472, %v896_v38 }
 0x79e   :  { %v670_v43 = vsub.f32 %v662_v29, %v669_v39 }
 0x7a0   :  { %v685_v45 = vsel %vm684_vm7, %v670_v43, %v672_v33 }
 0x7a1   :  { %v687_v46 = vsel %vm686_vm8, %v685_v45, %v676_v37 }
 0x7a2   :  { %v689_v48 = vsel %vm688_vm9, %v687_v46, %v679_v42 }
 0x7a3   :  { %v695_v50 = vcombine.low %v689_v48, %v692_v49 }
 0x7a5   :  { %v702_v51 = vrot.slane %v695_v50, %v701_v47 }
 0x7a7   :  { %v709_v52 = vrot.slane %v702_v51, %v701_v47 }
 0x7a9   :  { %715 = vst.msk [vmem:[%s1079_s5] sm:$0x3] %vm713_vm11, %v709_v52 }
 0x7aa   :  { %720 = vsyncpa [#allocation3], 1 }
 0x7ab   :  { %721 = vsyncpa [#allocation5], 1 }

</bundles_post_ra>
